<compile_context>
chip_gen: v6e
topology: v6e:2x2x1
jax: 0.10.0
libtpu: 0.0.40
codegen_flags: <defaults>
</compile_context>

<pallas_src>
import functools
import math

import jax
import jax.numpy as jnp
from jax.experimental import pallas as pl
from jax.experimental.pallas import tpu as pltpu


# ----------------------------------------------------------------------------
# VMEM budget / tile selection
# ----------------------------------------------------------------------------
_FALLBACK_VMEM_BYTES = 64 * 1024 * 1024


@functools.lru_cache(maxsize=1)
def _vmem_budget_bytes():
    """Per-generation VMEM ceiling: ~3/4 of physical, capped at 96 MiB.

    v5e/v6e (128 MiB physical) -> 96 MiB; v7x (64 MiB physical) -> 48 MiB.
    """
    try:
        cap = int(pltpu.get_tpu_info().vmem_capacity_bytes)
    except Exception:  # non-TPU backend / API drift: use a safe default
        cap = _FALLBACK_VMEM_BYTES
    return min((cap * 3) // 4, 96 * 1024 * 1024)


def _pick_lane_tile(n):
    """Lane-axis tile: prefer 512/256 (keeps the v6e/v7x 256x256 MXU full),
    fall back to 128, else the full dimension (lane-dense whenever possible)."""
    for t in (512, 256, 128):
        if n % t == 0:
            return t
    return n


def _pick_row_tile(m, row_bytes_per_step, budget):
    """Largest multiple-of-8 row tile that divides m and fits the VMEM budget.

    row_bytes_per_step: double-buffered VMEM bytes consumed per row of a tile.
    """
    usable = (budget * 3) // 4                   # headroom for compiler scratch
    max_tm = max(8, usable // max(row_bytes_per_step, 1))
    for t in (1024, 512, 256, 128, 64, 32, 16, 8):
        if t <= max_tm and m % t == 0:
            return t
    # Awkward m: one full block (small m) or ragged 8-row blocks (Pallas masks).
    return m if m <= max_tm else 8


def _pick_fused_tiles(m, n, k, itemsize, budget):
    """(TM, TN) for the fused LN+matmul+residual kernel (the K axis is whole)."""
    usable = (budget * 3) // 4

    def fits(tm, tn):
        per_step = 2 * itemsize * (tm * k        # x row panel (LN + matmul LHS)
                                   + k * tn      # W^T panel
                                   + tm * tn     # residual x tile
                                   + tm * tn)    # output tile
        return per_step <= usable

    tn_cands = [t for t in (512, 256, 128) if n % t == 0] or [n]
    tm_cands = [t for t in (1024, 512, 256, 128, 64, 32, 16, 8) if m % t == 0] or [m]
    tm, tn = tm_cands[-1], tn_cands[-1]
    done = False
    for cand_tn in tn_cands:
        for cand_tm in tm_cands:
            if fits(cand_tm, cand_tn):
                tm, tn = cand_tm, cand_tn
                done = True
                break
        if done:
            break
    # v7x megacore: ensure >= 2 parallel grid steps when possible so both
    # TensorCores get work (harmless on single-TC v5e/v6e).
    while (pl.cdiv(m, tm) * pl.cdiv(n, tn)) < 2 and tm > 8 and m % (tm // 2) == 0:
        tm //= 2
    return tm, tn


# ----------------------------------------------------------------------------
# Fused kernel (fast path):  out = x + (LayerNorm(x) @ W^T + bias)
# LN, matmul, bias and residual all happen in one grid step; only x, W, bias
# are read from HBM and only the final result is written back.
# ----------------------------------------------------------------------------
def _fused_ln_linear_residual_kernel(x_ref, xr_ref, a_ref, b_ref, wt_ref,
                                     bias_ref, o_ref, *, eps, compute_dtype):
    x = x_ref[...].astype(jnp.float32)            # (TM, K) row panel
    a = a_ref[...].astype(jnp.float32)            # (1, K)
    b = b_ref[...].astype(jnp.float32)            # (1, K)
    k = x.shape[-1]
    mean = jnp.mean(x, axis=-1, keepdims=True)
    xc = x - mean
    var = jnp.sum(xc * xc, axis=-1, keepdims=True) / (k - 1)   # torch unbiased std
    inv = pl.reciprocal(jnp.sqrt(var) + eps)      # EUP rcp; approx=True if tol allows
    normed = a * (xc * inv) + b                   # (TM, K) f32
    wt = wt_ref[...]                              # (K, TN) pre-transposed weight
    if compute_dtype is not None:
        normed = normed.astype(compute_dtype)     # optional bf16 MXU path
    acc = jnp.dot(normed, wt, preferred_element_type=jnp.float32)   # MXU, f32 acc
    out = acc + bias_ref[...].astype(jnp.float32) + xr_ref[...].astype(jnp.float32)
    o_ref[...] = out.astype(o_ref.dtype)


def fused_sublayer_linear_pallas(x2d, a_2, b_2, eps, wT, bias, compute_dtype=None):
    """out = x + (LayerNorm(x) @ wT + bias), fused in one Pallas kernel.

    x2d: (M, D), wT: (D, D) pre-transposed nn.Linear weight, bias: (D,).
    """
    M, K = x2d.shape
    K2, N = wT.shape
    assert K == K2 and N == K, "residual connection requires d_out == d_in"
    budget = _vmem_budget_bytes()
    tm, tn = _pick_fused_tiles(M, N, K, 4, budget)

    kernel = functools.partial(_fused_ln_linear_residual_kernel,
                               eps=eps, compute_dtype=compute_dtype)
    return pl.pallas_call(
        kernel,
        out_shape=jax.ShapeDtypeStruct((M, N), x2d.dtype),
        grid=(pl.cdiv(M, tm), pl.cdiv(N, tn)),
        in_specs=[
            pl.BlockSpec((tm, K), lambda i, j: (i, 0)),    # x row panel (LN + LHS)
            pl.BlockSpec((tm, tn), lambda i, j: (i, j)),   # x residual tile
            pl.BlockSpec((1, K), lambda i, j: (0, 0)),     # a_2
            pl.BlockSpec((1, K), lambda i, j: (0, 0)),     # b_2
            pl.BlockSpec((K, tn), lambda i, j: (0, j)),    # W^T panel
            pl.BlockSpec((1, tn), lambda i, j: (0, j)),    # bias
        ],
        out_specs=pl.BlockSpec((tm, tn), lambda i, j: (i, j)),
        compiler_params=pltpu.CompilerParams(
            dimension_semantics=("parallel", "parallel"),
            vmem_limit_bytes=budget,
        ),
    )(x2d, x2d, a_2.reshape(1, K), b_2.reshape(1, K), wT, bias.reshape(1, N))


# ----------------------------------------------------------------------------
# Generic fallback kernels (arbitrary sublayer callables)
# ----------------------------------------------------------------------------
def _layernorm_kernel(x_ref, a_ref, b_ref, o_ref, *, eps):
    x = x_ref[...].astype(jnp.float32)            # (TM, D)
    a = a_ref[...].astype(jnp.float32)            # (1, D)
    b = b_ref[...].astype(jnp.float32)            # (1, D)
    d = x.shape[-1]
    mean = jnp.mean(x, axis=-1, keepdims=True)
    xc = x - mean
    var = jnp.sum(xc * xc, axis=-1, keepdims=True) / (d - 1)   # torch unbiased std
    inv = pl.reciprocal(jnp.sqrt(var) + eps)      # EUP rcp + multiply (no divide)
    o_ref[...] = (a * (xc * inv) + b).astype(o_ref.dtype)


def layernorm_pallas(x, a_2, b_2, eps):
    """x: (..., D). Row-tiled; the feature axis stays dense on lanes."""
    orig_shape = x.shape
    D = orig_shape[-1]
    x2d = x.reshape(-1, D)
    M = x2d.shape[0]
    budget = _vmem_budget_bytes()
    TM = _pick_row_tile(M, 2 * 2 * D * 4, budget)   # x + out, double-buffered f32

    out = pl.pallas_call(
        functools.partial(_layernorm_kernel, eps=eps),
        out_shape=jax.ShapeDtypeStruct((M, D), x.dtype),
        grid=(pl.cdiv(M, TM),),
        in_specs=[
            pl.BlockSpec((TM, D), lambda i: (i, 0)),
            pl.BlockSpec((1, D), lambda i: (0, 0)),
            pl.BlockSpec((1, D), lambda i: (0, 0)),
        ],
        out_specs=pl.BlockSpec((TM, D), lambda i: (i, 0)),
        compiler_params=pltpu.CompilerParams(
            dimension_semantics=("parallel",),
            vmem_limit_bytes=budget,
        ),
    )(x2d, a_2.reshape(1, D), b_2.reshape(1, D))
    return out.reshape(orig_shape)


def _residual_add_kernel(x_ref, y_ref, o_ref):
    o_ref[...] = x_ref[...] + y_ref[...]


def residual_add_pallas(x, y):
    orig_shape = x.shape
    D = orig_shape[-1]
    x2d = x.reshape(-1, D)
    y2d = y.reshape(-1, D)
    M = x2d.shape[0]
    budget = _vmem_budget_bytes()
    TM = _pick_row_tile(M, 2 * 3 * D * 4, budget)

    out = pl.pallas_call(
        _residual_add_kernel,
        out_shape=jax.ShapeDtypeStruct((M, D), x.dtype),
        grid=(pl.cdiv(M, TM),),
        in_specs=[
            pl.BlockSpec((TM, D), lambda i: (i, 0)),
            pl.BlockSpec((TM, D), lambda i: (i, 0)),
        ],
        out_specs=pl.BlockSpec((TM, D), lambda i: (i, 0)),
        # Write the result over the (dead) sublayer-output buffer: one fewer
        # M*D HBM allocation.  (Real win is the fused path above.)
        input_output_aliases={1: 0},
        compiler_params=pltpu.CompilerParams(
            dimension_semantics=("parallel",),
            vmem_limit_bytes=budget,
        ),
    )(x2d, y2d)
    return out.reshape(orig_shape)


def _linear_kernel(x_ref, wt_ref, b_ref, o_ref, acc_ref):
    k = pl.program_id(2)

    @pl.when(k == 0)
    def _():
        acc_ref[...] = jnp.zeros_like(acc_ref)

    acc_ref[...] += jnp.dot(x_ref[...], wt_ref[...],
                            preferred_element_type=jnp.float32)

    @pl.when(k == pl.num_programs(2) - 1)
    def _():
        o_ref[...] = (acc_ref[...] + b_ref[...].astype(jnp.float32)).astype(o_ref.dtype)


def linear_pallas(x2d, wT, b):
    """x2d: (M, D_in), wT: (D_in, D_out) pre-transposed, b: (D_out,)."""
    M, K = x2d.shape
    K2, N = wT.shape
    assert K == K2
    budget = _vmem_budget_bytes()
    TN = _pick_lane_tile(N)
    TK = _pick_lane_tile(K)
    TM = _pick_row_tile(M, 2 * (TK + 2 * TN) * 4, budget)

    return pl.pallas_call(
        _linear_kernel,
        out_shape=jax.ShapeDtypeStruct((M, N), x2d.dtype),
        grid=(pl.cdiv(M, TM), pl.cdiv(N, TN), pl.cdiv(K, TK)),
        in_specs=[
            pl.BlockSpec((TM, TK), lambda i, j, k: (i, k)),
            pl.BlockSpec((TK, TN), lambda i, j, k: (k, j)),
            pl.BlockSpec((1, TN), lambda i, j, k: (0, j)),
        ],
        out_specs=pl.BlockSpec((TM, TN), lambda i, j, k: (i, j)),
        scratch_shapes=[pltpu.VMEM((TM, TN), jnp.float32)],
        compiler_params=pltpu.CompilerParams(
            dimension_semantics=("parallel", "parallel", "arbitrary"),
            vmem_limit_bytes=budget,
        ),
    )(x2d, wT, b.reshape(1, N))


# ----------------------------------------------------------------------------
# Module wrappers
# ----------------------------------------------------------------------------
class LinearPallas:
    """nn.Linear-style layer; weight stored pre-transposed (D_in, D_out).

    compute_dtype=jnp.bfloat16 stores the weight at rest in bf16 and feeds the
    MXU in bf16 (f32 accumulate): native MXU rate, half the W/x DMA bytes.
    Default None keeps float32 so the 1e-4 test tolerance holds.
    """

    def __init__(self, d_in, d_out, key, dtype=jnp.float32, compute_dtype=None):
        bound = 1.0 / math.sqrt(d_in)
        kw, kb = jax.random.split(key)
        w = jax.random.uniform(kw, (d_out, d_in),
                               minval=-bound, maxval=bound, dtype=dtype)
        self.wT = w.T.astype(compute_dtype or dtype)   # transpose once on host
        self.b = jax.random.uniform(kb, (d_out,),
                                    minval=-bound, maxval=bound, dtype=dtype)
        self.compute_dtype = compute_dtype

    def __call__(self, x):
        orig = x.shape
        y = linear_pallas(x.reshape(-1, orig[-1]), self.wT, self.b)
        return y.reshape(*orig[:-1], self.wT.shape[1])


class SublayerConnectionPallas:
    """x + dropout(sublayer(LayerNorm(x))); dropout is identity (eval mode)."""

    def __init__(self, size, dropout, dtype=jnp.float32):
        self.a_2 = jnp.ones((size,), dtype=dtype)
        self.b_2 = jnp.zeros((size,), dtype=dtype)
        self.eps = 1e-6
        self.dropout_p = dropout
        # TODO(synk): dropout omitted (identity / eval-mode semantics); a
        # training-mode mask would need pltpu.prng_random_bits in the epilogue.

    def __call__(self, x, sublayer):
        orig = x.shape
        D = orig[-1]
        # Fast path: known dense-linear sublayer with d_out == d_in, so
        # LayerNorm + matmul + bias + residual fuse into a single kernel and
        # no intermediate (`normed`, sublayer output) ever hits HBM.
        if isinstance(sublayer, LinearPallas) and sublayer.wT.shape == (D, D):
            out = fused_sublayer_linear_pallas(
                x.reshape(-1, D), self.a_2, self.b_2, self.eps,
                sublayer.wT, sublayer.b, compute_dtype=sublayer.compute_dtype)
            return out.reshape(orig)
        # Generic fallback for arbitrary sublayer callables.
        normed = layernorm_pallas(x, self.a_2, self.b_2, self.eps)
        return residual_add_pallas(x, sublayer(normed))


# ----------------------------------------------------------------------------
# Pure-JAX reference (mirrors the PyTorch module)
# ----------------------------------------------------------------------------
def reference_sublayer_connection(slc, x, sublayer_ref):
    mean = jnp.mean(x, axis=-1, keepdims=True)
    std = jnp.std(x, axis=-1, keepdims=True, ddof=1)   # torch unbiased std
    normed = slc.a_2 * (x - mean) / (std + slc.eps) + slc.b_2
    return x + sublayer_ref(normed)


if __name__ == "__main__":
    # D=128 keeps the feature/lane axis dense (no masked vst partial stores).
    B, S, D = 2, 8, 128
    key = jax.random.PRNGKey(0)
    k_x, k_lin = jax.random.split(key)

    x = jax.random.normal(k_x, (B, S, D), dtype=jnp.float32)

    slc = SublayerConnectionPallas(D, dropout=0.1)
    lin = LinearPallas(D, D, k_lin)           # demo sublayer (same-size linear)

    # 1) Fused fast path: LayerNorm + linear + bias + residual in one kernel.
    out_fused = jax.block_until_ready(slc(x, lin))

    # 2) Generic path (arbitrary callable): LN kernel -> linear kernel ->
    #    aliased residual-add kernel.
    out_generic = jax.block_until_ready(slc(x, lambda y: lin(y)))

    def sublayer_ref(y):
        return y @ lin.wT + lin.b

    ref = reference_sublayer_connection(slc, x, sublayer_ref)

    assert out_fused.shape == (B, S, D)
    assert jnp.allclose(out_fused, ref, atol=1e-4, rtol=1e-4), "fused path mismatch"
    assert jnp.allclose(out_generic, ref, atol=1e-4, rtol=1e-4), "generic path mismatch"

    print("KERNEL_OK")
</pallas_src>

<mosaic_0001>
module attributes {stable_mosaic.version = 11 : i64} {
  func.func @_fused_ln_linear_residual_kernel(%arg0: i32, %arg1: i32, %arg2: memref<8x128xf32, #tpu.memory_space<vmem>>, %arg3: memref<8x128xf32, #tpu.memory_space<vmem>>, %arg4: memref<1x128xf32, #tpu.memory_space<vmem>>, %arg5: memref<1x128xf32, #tpu.memory_space<vmem>>, %arg6: memref<128x128xf32, #tpu.memory_space<vmem>>, %arg7: memref<1x128xf32, #tpu.memory_space<vmem>>, %arg8: memref<8x128xf32, #tpu.memory_space<vmem>>) attributes {dimension_semantics = [#tpu.dimension_semantics<parallel>, #tpu.dimension_semantics<parallel>], iteration_bounds = array<i64: 2, 1>, scalar_prefetch = 0 : i64, scratch_operands = 0 : i64, tpu.core_type = #tpu.core_type<tc>, window_params = [{transform_indices = @transform_0, window_bounds = array<i64: 8, 128>}, {transform_indices = @transform_1, window_bounds = array<i64: 8, 128>}, {pipeline_mode = #tpu.pipeline_mode<synchronous>, transform_indices = @transform_2, window_bounds = array<i64: 1, 128>}, {pipeline_mode = #tpu.pipeline_mode<synchronous>, transform_indices = @transform_3, window_bounds = array<i64: 1, 128>}, {transform_indices = @transform_4, window_bounds = array<i64: 128, 128>}, {transform_indices = @transform_5, window_bounds = array<i64: 1, 128>}, {transform_indices = @transform_6, window_bounds = array<i64: 8, 128>}]} {
    %c0 = arith.constant 0 : index
    %c0_0 = arith.constant 0 : index
    %0 = vector.load %arg2[%c0, %c0_0] : memref<8x128xf32, #tpu.memory_space<vmem>>, vector<8x128xf32>
    %c0_1 = arith.constant 0 : index
    %c0_2 = arith.constant 0 : index
    %1 = vector.load %arg4[%c0_1, %c0_2] : memref<1x128xf32, #tpu.memory_space<vmem>>, vector<1x128xf32>
    %c0_3 = arith.constant 0 : index
    %c0_4 = arith.constant 0 : index
    %2 = vector.load %arg5[%c0_3, %c0_4] : memref<1x128xf32, #tpu.memory_space<vmem>>, vector<1x128xf32>
    %cst = arith.constant dense<0.000000e+00> : vector<8xf32>
    %3 = vector.multi_reduction <add>, %0, %cst [1] : vector<8x128xf32> to vector<8xf32>
    %4 = vector.shape_cast %3 : vector<8xf32> to vector<8x1xf32>
    %cst_5 = arith.constant 1.280000e+02 : f32
    %5 = vector.broadcast %cst_5 : f32 to vector<8x1xf32>
    %6 = arith.divf %4, %5 : vector<8x1xf32>
    %7 = vector.broadcast %6 : vector<8x1xf32> to vector<8x128xf32>
    %8 = arith.subf %0, %7 : vector<8x128xf32>
    %9 = arith.mulf %8, %8 : vector<8x128xf32>
    %cst_6 = arith.constant dense<0.000000e+00> : vector<8xf32>
    %10 = vector.multi_reduction <add>, %9, %cst_6 [1] : vector<8x128xf32> to vector<8xf32>
    %11 = vector.shape_cast %10 : vector<8xf32> to vector<8x1xf32>
    %cst_7 = arith.constant 1.270000e+02 : f32
    %12 = vector.broadcast %cst_7 : f32 to vector<8x1xf32>
    %13 = arith.divf %11, %12 : vector<8x1xf32>
    %14 = math.sqrt %13 : vector<8x1xf32>
    %cst_8 = arith.constant 9.99999997E-7 : f32
    %15 = vector.broadcast %cst_8 : f32 to vector<8x1xf32>
    %16 = arith.addf %14, %15 : vector<8x1xf32>
    %17 = tpu.reciprocal %16 : vector<8x1xf32> -> vector<8x1xf32>
    %18 = vector.broadcast %17 : vector<8x1xf32> to vector<8x128xf32>
    %19 = arith.mulf %8, %18 : vector<8x128xf32>
    %20 = vector.broadcast %1 : vector<1x128xf32> to vector<8x128xf32>
    %21 = arith.mulf %20, %19 : vector<8x128xf32>
    %22 = vector.broadcast %2 : vector<1x128xf32> to vector<8x128xf32>
    %23 = arith.addf %21, %22 : vector<8x128xf32>
    %c0_9 = arith.constant 0 : index
    %c0_10 = arith.constant 0 : index
    %24 = vector.load %arg6[%c0_9, %c0_10] : memref<128x128xf32, #tpu.memory_space<vmem>>, vector<128x128xf32>
    %cst_11 = arith.constant dense<0.000000e+00> : vector<8x128xf32>
    %25 = tpu.matmul %23, %24, %cst_11 {dimension_numbers = #tpu.dot_dimension_numbers<[1], [0], [0], [1], [0, 0, 1, 1], [], []>} : vector<8x128xf32>, vector<128x128xf32>, vector<8x128xf32> -> vector<8x128xf32>
    %c0_12 = arith.constant 0 : index
    %c0_13 = arith.constant 0 : index
    %26 = vector.load %arg7[%c0_12, %c0_13] : memref<1x128xf32, #tpu.memory_space<vmem>>, vector<1x128xf32>
    %27 = vector.broadcast %26 : vector<1x128xf32> to vector<8x128xf32>
    %28 = arith.addf %25, %27 : vector<8x128xf32>
    %c0_14 = arith.constant 0 : index
    %c0_15 = arith.constant 0 : index
    %29 = vector.load %arg3[%c0_14, %c0_15] : memref<8x128xf32, #tpu.memory_space<vmem>>, vector<8x128xf32>
    %30 = arith.addf %28, %29 : vector<8x128xf32>
    %c0_16 = arith.constant 0 : index
    %c0_17 = arith.constant 0 : index
    %31 = vector.load %arg8[%c0_16, %c0_17] : memref<8x128xf32, #tpu.memory_space<vmem>>, vector<8x128xf32>
    tpu.vector_store %arg8[%c0_16, %c0_17], %30 {strides = array<i32>} : memref<8x128xf32, #tpu.memory_space<vmem>>, vector<8x128xf32>,
    return
  }
  func.func @transform_0(%arg0: i32, %arg1: i32) -> (i32, i32) {
    %c0_i32 = arith.constant 0 : i32
    %c0_i32_0 = arith.constant 0 : i32
    return %arg0, %c0_i32 : i32, i32
  }
  func.func @transform_1(%arg0: i32, %arg1: i32) -> (i32, i32) {
    %c0_i32 = arith.constant 0 : i32
    return %arg0, %arg1 : i32, i32
  }
  func.func @transform_2(%arg0: i32, %arg1: i32) -> (i32, i32) {
    %c0_i32 = arith.constant 0 : i32
    %c0_i32_0 = arith.constant 0 : i32
    %c0_i32_1 = arith.constant 0 : i32
    return %c0_i32, %c0_i32_0 : i32, i32
  }
  func.func @transform_3(%arg0: i32, %arg1: i32) -> (i32, i32) {
    %c0_i32 = arith.constant 0 : i32
    %c0_i32_0 = arith.constant 0 : i32
    %c0_i32_1 = arith.constant 0 : i32
    return %c0_i32, %c0_i32_0 : i32, i32
  }
  func.func @transform_4(%arg0: i32, %arg1: i32) -> (i32, i32) {
    %c0_i32 = arith.constant 0 : i32
    %c0_i32_0 = arith.constant 0 : i32
    return %c0_i32, %arg1 : i32, i32
  }
  func.func @transform_5(%arg0: i32, %arg1: i32) -> (i32, i32) {
    %c0_i32 = arith.constant 0 : i32
    %c0_i32_0 = arith.constant 0 : i32
    return %c0_i32, %arg1 : i32, i32
  }
  func.func @transform_6(%arg0: i32, %arg1: i32) -> (i32, i32) {
    %c0_i32 = arith.constant 0 : i32
    return %arg0, %arg1 : i32, i32
  }
}

</mosaic_0001>

<bundles_post_ra>
// kernel: tpu_custom_call.1
= control target key start
LH: loop header
LB: loop body
LE: loop exit
PB: predicated region body
PF: predicated region fallthrough
CT: control target
= control target key end

     0   :  { %s1209_s0 = inlined_call_operand.hbm [shape: f32[16,128], index: 0, kind: input, shape index: {}]   ;;  %s1210_s1 = inlined_call_operand.hbm [shape: f32[16,128], index: 1, kind: input, shape index: {}]   ;;  %s1211_s2 = inlined_call_operand.vmem [shape: f32[1,128], index: 2, kind: input, shape index: {}]   ;;  %s1212_s3 = inlined_call_operand.vmem [shape: f32[1,128], index: 3, kind: input, shape index: {}]   ;;  %s1213_s4 = inlined_call_operand.hbm [shape: f32[128,128], index: 4, kind: input, shape index: {}]   ;;  %s1214_s5 = inlined_call_operand.vmem [shape: f32[1,128], index: 5, kind: input, shape index: {}]   ;;  %s1215_s6 = inlined_call_operand.hbm [shape: f32[16,128], index: 6, kind: output, shape index: {}]  }
   0x1   :  { %1219 = sst [smem:[#allocation16_spill]] %s1213_s4 }
   0x2   :  { %11 = vsyncpa [#allocation3], 0 }
   0x3   :  { %13 = vsyncpa [#allocation3 + $0x1], 0 }
   0x4   :  { %14 = vsyncpa [#allocation6], 0 }
   0x5   :  { %16 = vsyncpa [#allocation6 + $0x1], 0 }
   0x6   :  { %17 = vsyncpa [#allocation4], 0 }
   0x7   :  { %19 = vsyncpa [#allocation4 + $0x1], 0  ;;  %s1005_s21 = smov 0   ;;  %s1007_s22 = smov 0  }
   0x8   :  { %s1009_s23 = smov 0   ;;  %s1011_s24 = smov 0  }
   0x9   :  { %s1013_s25 = smov 0   ;;  %s1015_s26 = smov 0  }
   0xa LB: > { %1220 = sst [smem:[#allocation13_spill]] %s956_s25  ;;  %s1036_s27 = sadd.s32 4294967295, %s960_s26   ;;  %s960_s26 = sphi %s1015_s26, %s25_s26   ;;  %s956_s25 = sphi %s1013_s25, %s1236_s25   ;;  %s952_s24 = sphi %s1011_s24, %s1235_s24   ;;  %s948_s23 = sphi %s1009_s23, %s1239_s23   ;;  %s944_s22 = sphi %s1007_s22, %s1238_s22   ;;  %s940_s21 = sphi %s1005_s21, %s1237_s21  }
   0xb   : > { %s631_s28 = sadd.s32 4294967294, %s960_s26   ;;  %p57_p0 = scmp.ne.s32.totalorder %s944_s22, %s940_s21 }
   0xc   : > { %p58_p1 = scmp.eq.s32.totalorder %s1036_s27, 0  ;;  %p211_p3 = scmp.eq.s32.totalorder %s631_s28, 1 }
   0xd   : > { %p632_p5 = scmp.ge.s32.totalorder %s960_s26, 1  ;;  %p218_p7 = scmp.lt.s32.totalorder %s960_s26, 3 }
   0xe   : > { %p1045_p4 = por %p58_p1, %p57_p0  ;;  %p1050_p6 = por %p211_p3, %p57_p0 }
   0xf   : > { %p1055_p8 = pnand %p632_p5, %p218_p7  ;;  %s962_s8 = smov [#allocation7]  }
  0x10   : > { %s1222_s30 = scalar_select %p1050_p6, 1, 0 }
  0x11   : > { %s238_s9 = sshll.u32 %s962_s8, 4  ;;  %p714_p9 = pneg %p1055_p8  ;;  %s239_s9 = int_to_ptr.vmem [resolvable:$true] %s238_s9 }
  0x12   : > { %1223 = sst [smem:[#allocation14_spill]] %s1222_s30  ;;  %s37_s11 = sadd.s32 1, %s956_s25 }
  0x13   : > { %p1064_p11 = pnand %p714_p9, %p58_p1  ;;  %s801_s12 = scalar_lea.vmem %s239_s9, 2048 }
  0x14   : > { %p802_p13 = scmp.ne.s32.totalorder %s239_s9, %s801_s12  ;;  %p809_p5 = scmp.lt.s32.totalorder %s239_s9, %s239_s9 }
  0x15   : > { %p792_p12 = pneg %p1064_p11  ;;  %p810_p7 = scmp.lt.s32.totalorder %s801_s12, %s801_s12 }
  0x17   : > { %p804_p0 = pnand %p802_p13, %p792_p12  ;;  %p811_p2 = por %p810_p7, %p809_p5 }
  0x19   : > { %p805_p3 = pneg %p804_p0 }
  0x1b   : > { %p812_p6 = pnand %p811_p2, %p805_p3 }
  0x1d   : > { %815 = shalt.err (!%p812_p6)
}
  0x1e   : > { %s963_s13 = smov 128   ;;  %s964_s14 = smov 8  }
  0x1f   : > { %s1226_s4 = sld [smem:[#allocation16_spill]]  ;;  %p39_p2 = scmp.ge.s32.totalorder %s37_s11, 2 }
  0x20   : > { %s44_s17 = sadd.s32 1, %s948_s23  ;;  %p51_p6 = scmp.ne.s32.totalorder %s948_s23, %s944_s22 }
  0x21   : > { %p52_p9 = scmp.eq.s32.totalorder %s960_s26, 0  ;;  %s1241_s11 = smov (%p39_p2, %s37_s11), 0 }
  0x22   : > { %1227 = sst [smem:[#allocation15_spill]] %s1241_s11  ;;  %p1229_p13 = scmp.eq.s32.totalorder %s1036_s27, 1 }
  0x23   : > { %p1082_p12 = por %p52_p9, %p51_p6  ;;  %s41_s20 = ssub.s32 %s956_s25, %s1241_s11 }
  0x24   : > { %p1088_p0 = por %p1229_p13, %p51_p6  ;;  %p42_p3 = scmp.eq.s32.totalorder %s41_s20, 0 }
  0x25   : > { %717 = dma.hbm_to_vmem [thread:$0]  (!%p1064_p11), %s1226_s4, 2048, %s239_s9, [#allocation6], %s963_s13, %s963_s13, %s964_s14  }
  0x26   : > { %p730_p11 = scmp.lt.s32.totalorder %s960_s26, 2  ;;  %s258_s28 = sand.u32 1, %s948_s23  }
  0x27   : > { %s636_s8 = sshll.u32 %s258_s28, 3  ;;  %s637_s10 = sshll.u32 %s956_s25, 7 }
  0x28   : > { %s1097_s9 = scalar_select %p42_p3, %s948_s23, %s44_s17  }
  0x29   : > { %s267_s14 = scalar_lea.hbm %s1209_s0, %s637_s10  ;;  %s262_s15 = scalar_lea.vmem [#allocation2], %s636_s8 }
  0x2a   : > { %s269_s16 = sshll.u32 %s262_s15, 4  ;;  %p1105_p5 = pnand %p730_p11, %p1082_p12  ;;  %s270_s16 = int_to_ptr.vmem [resolvable:$true] %s269_s16 }
  0x2b   : > { %s1112_s17 = scalar_lea.hbm %s1210_s1, %s637_s10  ;;  %s276_s20 = sand.u32 1, %s960_s26  }
  0x2c   : > { %s259_s25 = scalar_lea.sflag [#allocation3], %s258_s28  ;;  %p818_p7 = pneg %p1105_p5 }
  0x2d   : > { %s829_s12 = scalar_lea.vmem %s270_s16, 128  ;;  %s965_s18 = smov [#allocation2]  }
  0x2e   : > { %p830_p2 = scmp.ne.s32.totalorder %s270_s16, %s829_s12  ;;  %s834_s13 = sshll.u32 %s965_s18, 4  ;;  %s835_s13 = int_to_ptr.vmem [resolvable:$false] %s834_s13 }
  0x2f   : > { %s836_s15 = scalar_lea.vmem %s835_s13, 256  ;;  %p837_p12 = scmp.lt.s32.totalorder %s270_s16, %s835_s13 }
  0x30   : > { %p832_p6 = pnand %p830_p2, %p818_p7  ;;  %p838_p13 = scmp.lt.s32.totalorder %s836_s15, %s829_s12 }
  0x32   : > { %p833_p9 = pneg %p832_p6  ;;  %p839_p11 = por %p838_p13, %p837_p12 }
  0x34   : > { %p840_p3 = pnand %p839_p11, %p833_p9 }
  0x36   : > { %843 = shalt.err (!%p840_p3)
}
  0x37   : > { %721 = dma.hbm_to_vmem [thread:$0]  (!%p1105_p5), %s267_s14, 128, %s270_s16, %s259_s25  }
  0x38   : > { %s280_s30 = scalar_lea.vmem [#allocation5], %s636_s8  ;;  %s277_s28 = scalar_lea.sflag [#allocation6], %s276_s20 }
  0x39   : > { %s288_s11 = sshll.u32 %s280_s30, 4  ;;  %s966_s18 = smov [#allocation5]   ;;  %s289_s11 = int_to_ptr.vmem [resolvable:$true] %s288_s11 }
  0x3a   : > { %s857_s10 = scalar_lea.vmem %s289_s11, 128  ;;  %s862_s13 = sshll.u32 %s966_s18, 4  ;;  %s863_s13 = int_to_ptr.vmem [resolvable:$false] %s862_s13 }
  0x3b   : > { %p858_p2 = scmp.ne.s32.totalorder %s289_s11, %s857_s10  ;;  %s864_s12 = scalar_lea.vmem %s863_s13, 256 }
  0x3c   : > { %p865_p9 = scmp.lt.s32.totalorder %s289_s11, %s863_s13  ;;  %p866_p12 = scmp.lt.s32.totalorder %s864_s12, %s857_s10 }
  0x3d   : > { %p860_p6 = pnand %p858_p2, %p818_p7 }
  0x3e   : > { %p867_p13 = por %p866_p12, %p865_p9 }
  0x3f   : > { %p861_p10 = pneg %p860_p6 }
  0x41   : > { %p868_p11 = pnand %p867_p13, %p861_p10 }
  0x43   : > { %871 = shalt.err (!%p868_p11)
}
  0x44   : > { %724 = dma.hbm_to_vmem [thread:$0]  (!%p1105_p5), %s1112_s17, 128, %s289_s11, %s277_s28  }
  0x45   : > { %297 = sbr.rel (%p1055_p8) target bundleno = 615 (0x267), region = 44  ;;  %s1131_s25 = sand.u32 (!%p1055_p8), 1, %s944_s22  }
  0x46   : > { %s1134_s8 = sshll.u32 (!%p1055_p8), %s1131_s25, 3  ;;  %s300_s14 = scalar_lea.sflag (!%p1055_p8), [#allocation3], %s1131_s25 }
  0x47   : > { %s303_s16 = scalar_lea.vmem (!%p1055_p8), [#allocation2], %s1134_s8 }
  0x4a   : > { %923 = dma.done.wait (%p1045_p4), %s300_s14, 128  }
  0x4b   : > { %925 = vsyncadd (%p1045_p4), %s300_s14, 4294967168  ;;  %s308_s4 = sand.u32 1, %s1036_s27   ;;  %s312_s17 = scalar_lea.vmem [#allocation5], %s1134_s8 }
  0x4c   : > { %s309_s7 = scalar_lea.sflag [#allocation6], %s308_s4 }
  0x4d   : > { %927 = dma.done.wait (%p1045_p4), %s309_s7, 128  }
  0x4e   : > { %929 = vsyncadd (%p1045_p4), %s309_s7, 4294967168 }
  0x4f   : > { %931 = dma.done.wait (%p58_p1), [#allocation6], 2048  }
  0x50   : > { %933 = vsyncadd (%p58_p1), [#allocation6], 4294965248  ;;  %v356_v0 = vld [vmem:[%s303_s16] sm:$0xff]  ;;  %v967_v5 = vmov 0.0   ;;  %v408_v6 = vld [vmem:[#allocation7 + $0x78] sm:$0xff]  ;;  %vm968_vm0 = vmmov 0  }
  0x51   : > { %359 = vadd.xlane.f32.xlu0 %v356_v0  ;;  %669 = vmatprep.subr.mxu0 %v967_v5  ;;  %v407_v7 = vld [vmem:[#allocation7 + $0x70] sm:$0xff]  ;;  %v406_v8 = vld [vmem:[#allocation7 + $0x68] sm:$0xff]  ;;  %v405_v9 = vld [vmem:[#allocation7 + $0x60] sm:$0xff]  ;;  %s649_s28 = sshll.u32 %s952_s24, 7  ;;  %s352_s10 = scalar_lea.vmem [#allocation8], %s1134_s8 }
  0x52   : > { %670 = vmatpush3.msra.mxu0 %v408_v6  ;;  %v404_v10 = vld [vmem:[#allocation7 + $0x58] sm:$0xff]  ;;  %v403_v11 = vld [vmem:[#allocation7 + $0x50] sm:$0xff]  ;;  %v402_v12 = vld [vmem:[#allocation7 + $0x48] sm:$0xff]  ;;  %701 = vmatprep.mubr.msk.f32.mxu0 %vm968_vm0, %v967_v5  ;;  %s504_s18 = sshll.u32 %s352_s10, 4  ;;  %s502_s14 = scalar_lea.hbm %s1215_s6, %s649_s28  ;;  %s505_s18 = int_to_ptr.vmem [resolvable:$true] %s504_s18 }
  0x53   : > { %671 = vmatprep.subr.mxu0 %v967_v5  ;;  %v401_v13 = vld [vmem:[#allocation7 + $0x40] sm:$0xff]  ;;  %v400_v14 = vld [vmem:[#allocation7 + $0x38] sm:$0xff]  ;;  %v399_v15 = vld [vmem:[#allocation7 + $0x30] sm:$0xff]  ;;  %s490_s16 = scalar_lea.sflag [#allocation4], %s1131_s25  ;;  %s872_s4 = scalar_lea.vmem %s505_s18, 128 }
  0x54   : > { %672 = vmatpush3.msra.mxu0 %v407_v7  ;;  %v398_v16 = vld [vmem:[#allocation7 + $0x28] sm:$0xff]  ;;  %v397_v17 = vld [vmem:[#allocation7 + $0x20] sm:$0xff]  ;;  %v396_v18 = vld [vmem:[#allocation7 + $0x18] sm:$0xff]  ;;  %p873_p1 = scmp.ne.s32.totalorder %s505_s18, %s872_s4  ;;  %s969_s7 = smov [#allocation8]  }
  0x55   : > { %673 = vmatprep.subr.mxu0 %v967_v5  ;;  %v395_v19 = vld [vmem:[#allocation7 + $0x10] sm:$0xff]  ;;  %v394_v20 = vld [vmem:[#allocation7 + $0x8] sm:$0xff]  ;;  %v393_v21 = vld [vmem:[#allocation7] sm:$0xff] }
  0x56   : > { %674 = vmatpush3.msra.mxu0 %v406_v8  ;;  %v645_v31 = vld [vmem:[%s1211_s2] ss:$0 sm:$0xff]  ;;  %v486_v38 = vld [vmem:[%s312_s17] sm:$0xff]  ;;  %p874_p4 = pnand %p873_p1, %p1088_p0  ;;  %s876_s17 = sshll.u32 %s969_s7, 4  ;;  %s877_s17 = int_to_ptr.vmem [resolvable:$false] %s876_s17 }
  0x57   : > { %675 = vmatprep.subr.mxu0 %v967_v5  ;;  %v646_v33 = vld [vmem:[%s1212_s3] ss:$0 sm:$0xff]  ;;  %s878_s24 = scalar_lea.vmem %s877_s17, 256  ;;  %p879_p10 = scmp.lt.s32.totalorder %s505_s18, %s877_s17 }
  0x58   : > { %676 = vmatpush3.msra.mxu0 %v405_v9  ;;  %v647_v36 = vld [vmem:[%s1214_s5] ss:$0 sm:$0xff]  ;;  %p875_p8 = pneg %p874_p4  ;;  %p880_p5 = scmp.lt.s32.totalorder %s878_s24, %s872_s4 }
  0x59   : > { %677 = vmatprep.subr.mxu0 %v967_v5 }
  0x5a   : > { %678 = vmatpush3.msra.mxu0 %v404_v10  ;;  %p881_p7 = por %p880_p5, %p879_p10 }
  0x5b   : > { %679 = vmatprep.subr.mxu0 %v967_v5 }
  0x5c   : > { %680 = vmatpush3.msra.mxu0 %v403_v11  ;;  %p882_p3 = pnand %p881_p7, %p875_p8 }
  0x5d   : > { %681 = vmatprep.subr.mxu0 %v967_v5 }
  0x5e   : > { %682 = vmatpush3.msra.mxu0 %v402_v12 }
  0x5f   : > { %683 = vmatprep.subr.mxu0 %v967_v5 }
  0x60   : > { %684 = vmatpush3.msra.mxu0 %v401_v13 }
  0x61   : > { %685 = vmatprep.subr.mxu0 %v967_v5 }
  0x62   : > { %686 = vmatpush3.msra.mxu0 %v400_v14 }
  0x63   : > { %687 = vmatprep.subr.mxu0 %v967_v5 }
  0x64   : > { %688 = vmatpush3.msra.mxu0 %v399_v15 }
  0x65   : > { %689 = vmatprep.subr.mxu0 %v967_v5 }
  0x66   : > { %690 = vmatpush3.msra.mxu0 %v398_v16 }
  0x67   : > { %691 = vmatprep.subr.mxu0 %v967_v5 }
  0x68   : > { %692 = vmatpush3.msra.mxu0 %v397_v17 }
  0x69   : > { %693 = vmatprep.subr.mxu0 %v967_v5 }
  0x6a   : > { %694 = vmatpush3.msra.mxu0 %v396_v18 }
  0x6b   : > { %695 = vmatprep.subr.mxu0 %v967_v5 }
  0x6c   : > { %696 = vmatpush3.msra.mxu0 %v395_v19 }
  0x6d   : > { %697 = vmatprep.subr.mxu0 %v967_v5 }
  0x6e   : > { %698 = vmatpush3.msra.mxu0 %v394_v20 }
  0x6f   : > { %699 = vmatprep.subr.mxu0 %v967_v5 }
  0x70   : > { %700 = vmatpush3.msra.mxu0 %v393_v21 }
  0xda   : > { %v360_v1 = vpop.xlane.xlu0 %359 }
  0xdb   : > { %v362_v2 = vmul.f32 0.0078125, %v360_v1 }
  0xdd   : > { %v1152_v3 = vsub.f32 %v356_v0, %v362_v2 }
  0xdf   : > { %v364_v4 = vmul.f32 %v1152_v3, %v1152_v3 }
  0xe1   : > { %365 = vadd.xlane.f32.xlu0 %v364_v4 }
 0x16a   : > { %v366_v22 = vpop.xlane.xlu0 %365 }
 0x16b   : > { %v368_v23 = vmul.f32 0.007874016, %v366_v22 }
 0x16d   : > { %786 = vrsqrt.f32 %v368_v23  ;;  %vm371_vm1 = vcmp.eq.f32.partialorder %v368_v23, inf  ;;  %v374_v26 = vand.u32 2147483648, %v368_v23  ;;  %vm373_vm2 = vcmp.eq.f32.partialorder %v368_v23, 0.0 }
 0x17a   : > { %v787_v24 = vpop.eup %786 }
 0x17b   : > { %v370_v25 = vmul.f32 %v787_v24, %v368_v23 }
 0x17d   : > { %v372_v27 = vsel %vm371_vm1, %v368_v23, %v370_v25 }
 0x17e   : > { %v375_v28 = vsel %vm373_vm2, %v374_v26, %v372_v27 }
 0x17f   : > { %v376_v29 = vadd.f32 1e-06, %v375_v28 }
 0x181   : > { %788 = vrcp.f32 %v376_v29 }
 0x18e   : > { %v789_v30 = vpop.eup %788 }
 0x18f   : > { %v378_v32 = vmul.f32 %v789_v30, %v1152_v3 }
 0x191   : > { %v385_v34 = vmul.f32 %v645_v31, %v378_v32 }
 0x193   : > { %v392_v35 = vadd.f32 %v646_v33, %v385_v34 }
 0x195   : > { %702 = vmatmul.mubr.f32.vlgmr.msra.gmra.mxu0 %v392_v35 }
 0x255   : > { %v482_v37 = vpop.f32.mrf.mxu0 }
 0x256   : > { %v483_v39 = vadd.f32 %v647_v36, %v482_v37 }
 0x257   : > { %v703_v40 = vpop.f32.mrf.mxu0 }
 0x258   : > { %v487_v41 = vadd.f32 %v486_v38, %v483_v39 }
 0x25a   : > { %488 = vst [vmem:[%s352_s10] sm:$0xff] %v487_v41 }
 0x25b   : > { %885 = shalt.err (!%p882_p3)
}
 0x25c   : > { %s886_s8 = scalar_lea.hbm %s502_s14, 128  ;;  %s890_s29 = scalar_lea.hbm %s1215_s6, 256 }
 0x25d   : > { %p887_p2 = scmp.ne.s32.totalorder %s502_s14, %s886_s8  ;;  %p891_p12 = scmp.lt.s32.totalorder %s502_s14, %s1215_s6 }
 0x25e   : > { %p892_p13 = scmp.lt.s32.totalorder %s890_s29, %s886_s8 }
 0x25f   : > { %p888_p6 = pnand %p887_p2, %p1088_p0 }
 0x260   : > { %p893_p11 = por %p892_p13, %p891_p12 }
 0x261   : > { %p889_p9 = pneg %p888_p6 }
 0x263   : > { %p894_p1 = pnand %p893_p11, %p889_p9 }
 0x265   : > { %897 = shalt.err (!%p894_p1)
}
 0x266   : > { %712 = dma.vmem_to_hbm [thread:$0]  (%p1088_p0), %s505_s18, 128, %s502_s14, %s490_s16  }
 0x267 PF: > { %s1232_s30 = sld [smem:[#allocation14_spill]]  ;;  %s516_s11 = sand.u32 1, %s940_s21  }
 0x268   : > { %p1234_p8 = scmp.ge.s32.totalorder %s960_s26, 2  ;;  %s517_s28 = scalar_lea.sflag [#allocation4], %s516_s11 }
 0x26d   : > { %p1233_p4 = scmp.ne.s32.totalorder %s1232_s30, 0 }
 0x26f   : > { %p726_p10 = pnand %p1234_p8, %p1233_p4 }
 0x271   : > { %p727_p5 = pneg %p726_p10 }
 0x273   : > { %935 = dma.done.wait (%p727_p5), %s517_s28, 128  }
 0x274   : > { %937 = vsyncadd (%p727_p5), %s517_s28, 4294967168  ;;  %s25_s26 = sadd.s32 1, %s960_s26   ;;  %s1235_s24 = sld [smem:[#allocation13_spill]] }
 0x275   : > { %p22_p7 = scmp.ge.s32.totalorder %s25_s26, 4   ;;  %s1236_s25 = sld [smem:[#allocation15_spill]] }
 0x276   : > { %s1237_s21 = smov %s944_s22  ;;  %s1238_s22 = smov %s948_s23 }
 0x277   : > { %s1239_s23 = smov %s1097_s9  ;;  %24 = sbr.rel (!%p22_p7) target bundleno = 10 (0xa), region = 110 }
 0x27c   :  { %522 = vsyncpa [#allocation3], 1 }
 0x27d   :  { %524 = vsyncpa [#allocation3 + $0x1], 1 }
 0x27e   :  { %525 = vsyncpa [#allocation6], 1 }
 0x27f   :  { %527 = vsyncpa [#allocation6 + $0x1], 1 }
 0x280   :  { %528 = vsyncpa [#allocation4], 1 }
 0x281   :  { %530 = vsyncpa [#allocation4 + $0x1], 1 }

</bundles_post_ra>
